<compile_context>
chip_gen: v6e
topology: v6e:2x2x1
jax: 0.10.0
libtpu: 0.0.40
codegen_flags: <defaults>
</compile_context>

<pallas_src>
import jax
import jax.numpy as jnp
from jax import lax
from jax.experimental import pallas as pl
from jax.experimental.pallas import tpu as pltpu


def _round_up(x, m):
    return (x + m - 1) // m * m


def conv_encoder_kernel(x_ref, we_ref, w1_ref, w2_ref, w3_ref, wo_ref, o_ref):
    f32 = jnp.float32
    bf16 = jnp.bfloat16
    # Fused state/action embedding + time interleave: one K = T*(Ds+Da) matmul.
    seq = jnp.dot(x_ref[...], we_ref[...], preferred_element_type=f32).astype(bf16)
    # Conv1d(k=4) / Conv1d(k=2) / Conv1d(k=1) as banded / block-diagonal matmuls.
    # ReLU in f32 (v5e has no bf16 VALU); MXU operands are fed in bf16.
    h = jnp.maximum(jnp.dot(seq, w1_ref[...], preferred_element_type=f32), 0.0).astype(bf16)
    h = jnp.maximum(jnp.dot(h, w2_ref[...], preferred_element_type=f32), 0.0).astype(bf16)
    h = jnp.maximum(jnp.dot(h, w3_ref[...], preferred_element_type=f32), 0.0).astype(bf16)
    # Flatten + output Linear: one K = L2*H contraction (permutation baked in).
    o_ref[...] = jnp.dot(h, wo_ref[...], preferred_element_type=f32)


def _pack_weights(params, T, n0p, n1p, n2p, lp):
    """Zero-cost weight re-layout: fold time structure into dense bf16 matrices."""
    ws, wa = params["ws"], params["wa"]            # (H, Ds), (H, Da)
    w1, w2, w3 = params["w1"], params["w2"], params["w3"]
    wout = params["wout"]                          # (latent, H*L2)
    H = ws.shape[0]
    latent = wout.shape[0]
    TT = 2 * T
    L1, L2 = TT - 3, TT - 4
    f32 = jnp.float32
    bf16 = jnp.bfloat16

    # Embeddings: states -> even time slots, actions -> odd time slots.
    sel_s = jnp.zeros((T, TT), f32).at[jnp.arange(T), 2 * jnp.arange(T)].set(1.0)
    sel_a = jnp.zeros((T, TT), f32).at[jnp.arange(T), 2 * jnp.arange(T) + 1].set(1.0)
    we_s = jnp.kron(sel_s, ws.T.astype(f32))       # (T*Ds, 2T*H)
    we_a = jnp.kron(sel_a, wa.T.astype(f32))       # (T*Da, 2T*H)
    we = jnp.concatenate([we_s, we_a], axis=0)     # (T*(Ds+Da), 2T*H)

    # Conv1d(kernel=4, valid) as a banded block matrix (2T*H, L1*H).
    w1b = sum(jnp.kron(jnp.eye(TT, L1, k=-t, dtype=f32), w1[:, :, t].T.astype(f32))
              for t in range(4))
    # Conv1d(kernel=2, valid) as a banded block matrix (L1*H, L2*H).
    w2b = sum(jnp.kron(jnp.eye(L1, L2, k=-t, dtype=f32), w2[:, :, t].T.astype(f32))
              for t in range(2))
    # Conv1d(kernel=1) as a block-diagonal matrix (L2*H, L2*H).
    w3b = jnp.kron(jnp.eye(L2, dtype=f32), w3[:, :, 0].T.astype(f32))

    # Flatten is PyTorch (channel, time)-major; permute the output weight so a
    # single (L2*H, latent) contraction over the time-major layout matches it.
    wo = jnp.transpose(wout.reshape(latent, H, L2), (2, 1, 0)).reshape(L2 * H, latent)
    wo = wo.astype(f32)

    def pad(w, r, c):
        return jnp.pad(w, ((0, r - w.shape[0]), (0, c - w.shape[1])))

    # Lane-pad all matmul widths to multiples of 128 (zero padding -> exact).
    we = pad(we, we.shape[0], n0p).astype(bf16)
    w1b = pad(w1b, n0p, n1p).astype(bf16)
    w2b = pad(w2b, n1p, n2p).astype(bf16)
    w3b = pad(w3b, n2p, n2p).astype(bf16)
    wo = pad(wo, n2p, lp).astype(bf16)
    return we, w1b, w2b, w3b, wo


def _choose_batch_tile(B, batch_tile):
    # batch_tile must itself be a multiple of 8 (sublane alignment).
    batch_tile = _round_up(max(batch_tile, 8), 8)
    b8 = _round_up(B, 8)
    bt = min(batch_tile, b8)
    # v7x megacore: if we would end up with a single grid step but there is
    # enough batch to split, use two steps so both TensorCores get work.
    if b8 >= 16 and bt >= b8:
        bt = _round_up((b8 + 1) // 2, 8)
    bp = _round_up(b8, bt)
    return bt, bp


def conv_encoder_forward(states, actions, params, *, batch_tile=512):
    B, T, Ds = states.shape
    Da = actions.shape[-1]
    H = params["ws"].shape[0]
    latent = params["wout"].shape[0]
    TT = 2 * T
    L1, L2 = TT - 3, TT - 4
    Din = T * (Ds + Da)

    n0p = _round_up(TT * H, 128)
    n1p = _round_up(L1 * H, 128)
    n2p = _round_up(L2 * H, 128)
    lp = _round_up(latent, 128)

    # Guardrail: packed banded weights grow ~quadratically in T*H.  Keep them
    # (double-buffered) comfortably inside v7x's 64 MiB VMEM.
    w_bytes = 2 * (Din * n0p + n0p * n1p + n1p * n2p + n2p * n2p + n2p * lp)  # bf16
    if w_bytes > (24 << 20):
        # TODO(synk): fall back to a shifted-slice conv formulation for large T*H.
        raise ValueError(
            f"Packed conv weights ({w_bytes/2**20:.1f} MiB bf16) too large to stay "
            "VMEM-resident; use a shifted-slice conv formulation instead.")

    we, w1b, w2b, w3b, wo = _pack_weights(params, T, n0p, n1p, n2p, lp)

    # Fold (time, feature) onto the lane axis; fuse state/action into one input.
    x = jnp.concatenate(
        [states.reshape(B, T * Ds), actions.reshape(B, T * Da)], axis=1
    ).astype(jnp.bfloat16)

    bt, Bp = _choose_batch_tile(B, batch_tile)
    if Bp != B:
        x = jnp.pad(x, ((0, Bp - B), (0, 0)))

    flops = 2 * Bp * (Din * n0p + n0p * n1p + n1p * n2p + n2p * n2p + n2p * lp)
    bytes_accessed = Bp * Din * 2 + w_bytes + Bp * lp * 4
    need = (2 * bt * Din * 2          # input double-buffer (bf16)
            + 2 * bt * lp * 4         # output double-buffer (f32)
            + 2 * w_bytes             # weights (double-buffered by default)
            + 6 * bt * n0p * 4        # intermediate activation headroom
            + (4 << 20))
    vmem_limit = int(min(max(need, 32 << 20), 64 << 20))

    out = pl.pallas_call(
        conv_encoder_kernel,
        out_shape=jax.ShapeDtypeStruct((Bp, lp), jnp.float32),
        grid=(Bp // bt,),
        in_specs=[
            pl.BlockSpec((bt, Din), lambda b: (b, 0)),
            pl.BlockSpec((Din, n0p), lambda b: (0, 0)),
            pl.BlockSpec((n0p, n1p), lambda b: (0, 0)),
            pl.BlockSpec((n1p, n2p), lambda b: (0, 0)),
            pl.BlockSpec((n2p, n2p), lambda b: (0, 0)),
            pl.BlockSpec((n2p, lp), lambda b: (0, 0)),
        ],
        out_specs=pl.BlockSpec((bt, lp), lambda b: (b, 0)),
        compiler_params=pltpu.CompilerParams(
            dimension_semantics=("parallel",),
            vmem_limit_bytes=vmem_limit),
        cost_estimate=pl.CostEstimate(
            flops=int(flops), transcendentals=0,
            bytes_accessed=int(bytes_accessed)),
    )(x, we, w1b, w2b, w3b, wo)
    return out[:B, :latent]


def reference_forward(states, actions, params):
    # Pure-JAX transcription of the PyTorch forward (NCL Conv1d semantics), f32.
    ws, wa = params["ws"], params["wa"]
    w1, w2, w3 = params["w1"], params["w2"], params["w3"]
    wout = params["wout"]
    B, T, _ = states.shape

    s_emb = states @ ws.T
    a_emb = actions @ wa.T
    seq = jnp.stack([s_emb, a_emb], axis=1)                    # (B, 2, T, H)
    seq = jnp.transpose(seq, (0, 2, 1, 3)).reshape(B, 2 * T, -1)
    x = jnp.transpose(seq, (0, 2, 1))                          # (B, H, 2T)

    def conv1d(inp, w):
        return lax.conv_general_dilated(
            inp, w, (1,), "VALID", dimension_numbers=("NCH", "OIH", "NCH"))

    h = jax.nn.relu(conv1d(x, w1))
    h = jax.nn.relu(conv1d(h, w2))
    h = jax.nn.relu(conv1d(h, w3))
    flat = h.reshape(B, -1)
    return flat @ wout.T


if __name__ == "__main__":
    B, T, Ds, Da, H, LAT = 2, 8, 4, 4, 16, 16
    L2 = 2 * T - 4  # flattened conv output is H * L2

    key = jax.random.PRNGKey(0)
    ks = jax.random.split(key, 8)
    params = {
        "ws":   jax.random.normal(ks[0], (H, Ds), jnp.float32) * 0.3,
        "wa":   jax.random.normal(ks[1], (H, Da), jnp.float32) * 0.3,
        "w1":   jax.random.normal(ks[2], (H, H, 4), jnp.float32) * 0.2,
        "w2":   jax.random.normal(ks[3], (H, H, 2), jnp.float32) * 0.2,
        "w3":   jax.random.normal(ks[4], (H, H, 1), jnp.float32) * 0.2,
        "wout": jax.random.normal(ks[5], (LAT, H * L2), jnp.float32) * 0.1,
    }
    states = jax.random.normal(ks[6], (B, T, Ds), jnp.float32)
    actions = jax.random.normal(ks[7], (B, T, Da), jnp.float32)

    out = conv_encoder_forward(states, actions, params)
    out = jax.block_until_ready(out)
    ref = reference_forward(states, actions, params)

    assert out.shape == (B, LAT), out.shape
    # bf16 operands with f32 accumulation -> relaxed tolerance vs. f32 reference.
    assert jnp.allclose(out, ref, atol=3e-2, rtol=3e-2), (out, ref)
    print("KERNEL_OK")
</pallas_src>

<mosaic_0001>
module attributes {stable_mosaic.version = 11 : i64} {
  func.func @conv_encoder_kernel(%arg0: i32, %arg1: memref<8x64xbf16, #tpu.memory_space<vmem>>, %arg2: memref<64x256xbf16, #tpu.memory_space<vmem>>, %arg3: memref<256x256xbf16, #tpu.memory_space<vmem>>, %arg4: memref<256x256xbf16, #tpu.memory_space<vmem>>, %arg5: memref<256x256xbf16, #tpu.memory_space<vmem>>, %arg6: memref<256x128xbf16, #tpu.memory_space<vmem>>, %arg7: memref<8x128xf32, #tpu.memory_space<vmem>>) attributes {dimension_semantics = [#tpu.dimension_semantics<parallel>], iteration_bounds = array<i64: 1>, scalar_prefetch = 0 : i64, scratch_operands = 0 : i64, tpu.core_type = #tpu.core_type<tc>, window_params = [{transform_indices = @transform_0, window_bounds = array<i64: 8, 64>}, {pipeline_mode = #tpu.pipeline_mode<synchronous>, transform_indices = @transform_1, window_bounds = array<i64: 64, 256>}, {pipeline_mode = #tpu.pipeline_mode<synchronous>, transform_indices = @transform_2, window_bounds = array<i64: 256, 256>}, {pipeline_mode = #tpu.pipeline_mode<synchronous>, transform_indices = @transform_3, window_bounds = array<i64: 256, 256>}, {pipeline_mode = #tpu.pipeline_mode<synchronous>, transform_indices = @transform_4, window_bounds = array<i64: 256, 256>}, {pipeline_mode = #tpu.pipeline_mode<synchronous>, transform_indices = @transform_5, window_bounds = array<i64: 256, 128>}, {transform_indices = @transform_6, window_bounds = array<i64: 8, 128>}]} {
    %c0 = arith.constant 0 : index
    %c0_0 = arith.constant 0 : index
    %0 = vector.load %arg1[%c0, %c0_0] : memref<8x64xbf16, #tpu.memory_space<vmem>>, vector<8x64xbf16>
    %c0_1 = arith.constant 0 : index
    %c0_2 = arith.constant 0 : index
    %1 = vector.load %arg2[%c0_1, %c0_2] : memref<64x256xbf16, #tpu.memory_space<vmem>>, vector<64x256xbf16>
    %cst = arith.constant dense<0.000000e+00> : vector<8x256xf32>
    %2 = tpu.matmul %0, %1, %cst {dimension_numbers = #tpu.dot_dimension_numbers<[1], [0], [0], [1], [0, 0, 1, 1], [], []>} : vector<8x64xbf16>, vector<64x256xbf16>, vector<8x256xf32> -> vector<8x256xf32>
    %3 = arith.truncf %2 : vector<8x256xf32> to vector<8x256xbf16>
    %c0_3 = arith.constant 0 : index
    %c0_4 = arith.constant 0 : index
    %4 = vector.load %arg3[%c0_3, %c0_4] : memref<256x256xbf16, #tpu.memory_space<vmem>>, vector<256x256xbf16>
    %cst_5 = arith.constant dense<0.000000e+00> : vector<8x256xf32>
    %5 = tpu.matmul %3, %4, %cst_5 {dimension_numbers = #tpu.dot_dimension_numbers<[1], [0], [0], [1], [0, 0, 1, 1], [], []>} : vector<8x256xbf16>, vector<256x256xbf16>, vector<8x256xf32> -> vector<8x256xf32>
    %cst_6 = arith.constant 0.000000e+00 : f32
    %6 = vector.broadcast %cst_6 : f32 to vector<8x256xf32>
    %7 = arith.maximumf %5, %6 : vector<8x256xf32>
    %8 = arith.truncf %7 : vector<8x256xf32> to vector<8x256xbf16>
    %c0_7 = arith.constant 0 : index
    %c0_8 = arith.constant 0 : index
    %9 = vector.load %arg4[%c0_7, %c0_8] : memref<256x256xbf16, #tpu.memory_space<vmem>>, vector<256x256xbf16>
    %cst_9 = arith.constant dense<0.000000e+00> : vector<8x256xf32>
    %10 = tpu.matmul %8, %9, %cst_9 {dimension_numbers = #tpu.dot_dimension_numbers<[1], [0], [0], [1], [0, 0, 1, 1], [], []>} : vector<8x256xbf16>, vector<256x256xbf16>, vector<8x256xf32> -> vector<8x256xf32>
    %cst_10 = arith.constant 0.000000e+00 : f32
    %11 = vector.broadcast %cst_10 : f32 to vector<8x256xf32>
    %12 = arith.maximumf %10, %11 : vector<8x256xf32>
    %13 = arith.truncf %12 : vector<8x256xf32> to vector<8x256xbf16>
    %c0_11 = arith.constant 0 : index
    %c0_12 = arith.constant 0 : index
    %14 = vector.load %arg5[%c0_11, %c0_12] : memref<256x256xbf16, #tpu.memory_space<vmem>>, vector<256x256xbf16>
    %cst_13 = arith.constant dense<0.000000e+00> : vector<8x256xf32>
    %15 = tpu.matmul %13, %14, %cst_13 {dimension_numbers = #tpu.dot_dimension_numbers<[1], [0], [0], [1], [0, 0, 1, 1], [], []>} : vector<8x256xbf16>, vector<256x256xbf16>, vector<8x256xf32> -> vector<8x256xf32>
    %cst_14 = arith.constant 0.000000e+00 : f32
    %16 = vector.broadcast %cst_14 : f32 to vector<8x256xf32>
    %17 = arith.maximumf %15, %16 : vector<8x256xf32>
    %18 = arith.truncf %17 : vector<8x256xf32> to vector<8x256xbf16>
    %c0_15 = arith.constant 0 : index
    %c0_16 = arith.constant 0 : index
    %19 = vector.load %arg6[%c0_15, %c0_16] : memref<256x128xbf16, #tpu.memory_space<vmem>>, vector<256x128xbf16>
    %cst_17 = arith.constant dense<0.000000e+00> : vector<8x128xf32>
    %20 = tpu.matmul %18, %19, %cst_17 {dimension_numbers = #tpu.dot_dimension_numbers<[1], [0], [0], [1], [0, 0, 1, 1], [], []>} : vector<8x256xbf16>, vector<256x128xbf16>, vector<8x128xf32> -> vector<8x128xf32>
    %c0_18 = arith.constant 0 : index
    %c0_19 = arith.constant 0 : index
    %21 = vector.load %arg7[%c0_18, %c0_19] : memref<8x128xf32, #tpu.memory_space<vmem>>, vector<8x128xf32>
    tpu.vector_store %arg7[%c0_18, %c0_19], %20 {strides = array<i32>} : memref<8x128xf32, #tpu.memory_space<vmem>>, vector<8x128xf32>,
    return
  }
  func.func @transform_0(%arg0: i32) -> (i32, i32) {
    %c0_i32 = arith.constant 0 : i32
    %c0_i32_0 = arith.constant 0 : i32
    return %arg0, %c0_i32 : i32, i32
  }
  func.func @transform_1(%arg0: i32) -> (i32, i32) {
    %c0_i32 = arith.constant 0 : i32
    %c0_i32_0 = arith.constant 0 : i32
    %c0_i32_1 = arith.constant 0 : i32
    return %c0_i32, %c0_i32_0 : i32, i32
  }
  func.func @transform_2(%arg0: i32) -> (i32, i32) {
    %c0_i32 = arith.constant 0 : i32
    %c0_i32_0 = arith.constant 0 : i32
    %c0_i32_1 = arith.constant 0 : i32
    return %c0_i32, %c0_i32_0 : i32, i32
  }
  func.func @transform_3(%arg0: i32) -> (i32, i32) {
    %c0_i32 = arith.constant 0 : i32
    %c0_i32_0 = arith.constant 0 : i32
    %c0_i32_1 = arith.constant 0 : i32
    return %c0_i32, %c0_i32_0 : i32, i32
  }
  func.func @transform_4(%arg0: i32) -> (i32, i32) {
    %c0_i32 = arith.constant 0 : i32
    %c0_i32_0 = arith.constant 0 : i32
    %c0_i32_1 = arith.constant 0 : i32
    return %c0_i32, %c0_i32_0 : i32, i32
  }
  func.func @transform_5(%arg0: i32) -> (i32, i32) {
    %c0_i32 = arith.constant 0 : i32
    %c0_i32_0 = arith.constant 0 : i32
    %c0_i32_1 = arith.constant 0 : i32
    return %c0_i32, %c0_i32_0 : i32, i32
  }
  func.func @transform_6(%arg0: i32) -> (i32, i32) {
    %c0_i32 = arith.constant 0 : i32
    %c0_i32_0 = arith.constant 0 : i32
    return %arg0, %c0_i32 : i32, i32
  }
}

</mosaic_0001>

<bundles_post_ra>
// kernel: tpu_custom_call.1
= control target key start
LH: loop header
LB: loop body
LE: loop exit
PB: predicated region body
PF: predicated region fallthrough
CT: control target
= control target key end

     0   :  { %11 = vsyncpa [#allocation3], 0  ;;  %s1656_s0 = inlined_call_operand.hbm [shape: bf16[8,64], index: 0, kind: input, shape index: {}]   ;;  %s1657_s1 = inlined_call_operand.hbm [shape: bf16[64,256], index: 1, kind: input, shape index: {}]   ;;  %s1658_s2 = inlined_call_operand.hbm [shape: bf16[256,256], index: 2, kind: input, shape index: {}]   ;;  %s1659_s3 = inlined_call_operand.hbm [shape: bf16[256,256], index: 3, kind: input, shape index: {}]   ;;  %s1660_s4 = inlined_call_operand.hbm [shape: bf16[256,256], index: 4, kind: input, shape index: {}]   ;;  %s1661_s5 = inlined_call_operand.hbm [shape: bf16[256,128], index: 5, kind: input, shape index: {}]   ;;  %s1662_s6 = inlined_call_operand.hbm [shape: f32[8,128], index: 6, kind: output, shape index: {}]  }
   0x1   :  { %12 = vsyncpa [#allocation6], 0 }
   0x2   :  { %13 = vsyncpa [#allocation9], 0 }
   0x3   :  { %14 = vsyncpa [#allocation12], 0 }
   0x4   :  { %15 = vsyncpa [#allocation4], 0  ;;  %s1576_s21 = smov [#allocation5]  }
   0x5   :  { %s31_s22 = sshll.u32 %s1576_s21, 4  ;;  %s32_s22 = int_to_ptr.vmem [resolvable:$true] %s31_s22 }
   0x6   :  { %s1434_s23 = scalar_lea.vmem %s32_s22, 1024  ;;  %p1439_p1 = scmp.lt.s32.totalorder %s32_s22, %s32_s22 }
   0x7   :  { %p1435_p0 = scmp.ne.s32.totalorder %s32_s22, %s1434_s23  ;;  %p1440_p2 = scmp.lt.s32.totalorder %s1434_s23, %s1434_s23 }
   0x9   :  { %p1441_p3 = por %p1440_p2, %p1439_p1 }
   0xb   :  { %p1442_p4 = pnand %p1441_p3, %p1435_p0 }
   0xd   :  { %1445 = shalt.err (!%p1442_p4)
}
   0xe   :  { %s1577_s24 = smov 128   ;;  %s1578_s25 = smov 8  }
   0xf   :  { %37 = dma.hbm_to_vmem [thread:$0]  %s1657_s1, 1024, %s32_s22, [#allocation6], %s1577_s24, %s1577_s24, %s1578_s25  }
  0x10   :  { %s1579_s28 = smov [#allocation8]   ;;  %s1580_s30 = smov [#allocation2]  }
  0x11   :  { %s55_s29 = sshll.u32 %s1579_s28, 4  ;;  %s22_s7 = sshll.u32 %s1580_s30, 4  ;;  %s56_s29 = int_to_ptr.vmem [resolvable:$true] %s55_s29  ;;  %s23_s7 = int_to_ptr.vmem [resolvable:$true] %s22_s7 }
  0x12   :  { %s1454_s8 = scalar_lea.vmem %s56_s29, 4096  ;;  %p1459_p6 = scmp.lt.s32.totalorder %s56_s29, %s56_s29 }
  0x13   :  { %p1455_p5 = scmp.ne.s32.totalorder %s56_s29, %s1454_s8  ;;  %p1460_p7 = scmp.lt.s32.totalorder %s1454_s8, %s1454_s8 }
  0x15   :  { %p1461_p8 = por %p1460_p7, %p1459_p6 }
  0x17   :  { %p1462_p9 = pnand %p1461_p8, %p1455_p5 }
  0x19   :  { %1465 = shalt.err (!%p1462_p9)
}
  0x1a   :  { %61 = dma.hbm_to_vmem [thread:$0]  %s1659_s3, 4096, %s56_s29, [#allocation9], %s1577_s24, %s1577_s24, %s1578_s25  }
  0x1b   :  { %s1474_s1 = scalar_lea.vmem %s23_s7, 64  ;;  %p1479_p11 = scmp.lt.s32.totalorder %s23_s7, %s23_s7 }
  0x1c   :  { %p1475_p10 = scmp.ne.s32.totalorder %s23_s7, %s1474_s1  ;;  %p1480_p12 = scmp.lt.s32.totalorder %s1474_s1, %s1474_s1 }
  0x1e   :  { %p1481_p13 = por %p1480_p12, %p1479_p11 }
  0x20   :  { %p1482_p0 = pnand %p1481_p13, %p1475_p10 }
  0x22   :  { %1485 = shalt.err (!%p1482_p0)
}
  0x23   :  { %25 = dma.hbm_to_vmem [thread:$0]  %s1656_s0, 64, %s23_s7, [#allocation3]  }
  0x24   :  { %s1581_s13 = smov [#allocation7]   ;;  %s1582_s15 = smov [#allocation10]  }
  0x25   :  { %s43_s14 = sshll.u32 %s1581_s13, 4  ;;  %s67_s16 = sshll.u32 %s1582_s15, 4  ;;  %s44_s14 = int_to_ptr.vmem [resolvable:$true] %s43_s14  ;;  %s68_s16 = int_to_ptr.vmem [resolvable:$true] %s67_s16 }
  0x26   :  { %s1494_s17 = scalar_lea.vmem %s44_s14, 4096  ;;  %p1499_p2 = scmp.lt.s32.totalorder %s44_s14, %s44_s14 }
  0x27   :  { %p1495_p1 = scmp.ne.s32.totalorder %s44_s14, %s1494_s17  ;;  %p1500_p3 = scmp.lt.s32.totalorder %s1494_s17, %s1494_s17 }
  0x29   :  { %p1501_p4 = por %p1500_p3, %p1499_p2 }
  0x2b   :  { %p1502_p5 = pnand %p1501_p4, %p1495_p1 }
  0x2d   :  { %1505 = shalt.err (!%p1502_p5)
}
  0x2e   :  { %49 = dma.hbm_to_vmem [thread:$0]  %s1658_s2, 4096, %s44_s14, [#allocation6], %s1577_s24, %s1577_s24, %s1578_s25  }
  0x2f   :  { %s1514_s0 = scalar_lea.vmem %s68_s16, 4096  ;;  %p1519_p7 = scmp.lt.s32.totalorder %s68_s16, %s68_s16 }
  0x30   :  { %p1515_p6 = scmp.ne.s32.totalorder %s68_s16, %s1514_s0  ;;  %p1520_p8 = scmp.lt.s32.totalorder %s1514_s0, %s1514_s0 }
  0x32   :  { %p1521_p9 = por %p1520_p8, %p1519_p7 }
  0x34   :  { %p1522_p10 = pnand %p1521_p9, %p1515_p6 }
  0x36   :  { %1525 = shalt.err (!%p1522_p10)
}
  0x37   :  { %73 = dma.hbm_to_vmem [thread:$0]  %s1660_s4, 4096, %s68_s16, [#allocation9], %s1577_s24, %s1577_s24, %s1578_s25  }
  0x38   :  { %s1583_s21 = smov [#allocation11]  }
  0x39   :  { %s79_s22 = sshll.u32 %s1583_s21, 4  ;;  %s80_s22 = int_to_ptr.vmem [resolvable:$true] %s79_s22 }
  0x3a   :  { %s1534_s23 = scalar_lea.vmem %s80_s22, 2048  ;;  %p1539_p12 = scmp.lt.s32.totalorder %s80_s22, %s80_s22 }
  0x3b   :  { %p1535_p11 = scmp.ne.s32.totalorder %s80_s22, %s1534_s23  ;;  %p1540_p13 = scmp.lt.s32.totalorder %s1534_s23, %s1534_s23 }
  0x3d   :  { %p1541_p0 = por %p1540_p13, %p1539_p12 }
  0x3f   :  { %p1542_p1 = pnand %p1541_p0, %p1535_p11 }
  0x41   :  { %1545 = shalt.err (!%p1542_p1)
}
  0x42   :  { %s1584_s2 = smov 64   ;;  %s1585_s26 = smov 4  }
  0x43   :  { %85 = dma.hbm_to_vmem [thread:$0]  %s1661_s5, 2048, %s80_s22, [#allocation12], %s1584_s2, %s1584_s2, %s1585_s26  }
  0x44   :  { %1566 = dma.done.wait [#allocation3], 64  }
  0x45   :  { %1567 = vsyncadd [#allocation3], 4294967232 }
  0x46   :  { %1568 = dma.done.wait [#allocation6], 5120  }
  0x47   :  { %1569 = vsyncadd [#allocation6], 4294962176 }
  0x48   :  { %1570 = dma.done.wait [#allocation9], 8192  }
  0x49   :  { %1571 = vsyncadd [#allocation9], 4294959104 }
  0x4a   :  { %1572 = dma.done.wait [#allocation12], 2048  }
  0x4b   :  { %1573 = vsyncadd [#allocation12], 4294965248  ;;  %v1586_v0 = vmov 0   ;;  %v1254_v1 = vld [vmem:[#allocation5 + $0x34] ss:$8 sps:$4 sm:$0xff]   ;;  %vm154_vm0 = vcmask 523264  }
  0x4c   :  { %190 = vmatprep.mubr.bf16.mxu0 %v1586_v0  ;;  %v1256_v2 = vld [vmem:[#allocation5 + $0x30] ss:$8 sps:$4 sm:$0xff]   ;;  %166 = vmatprep.subr.bf16.mxu0 %v1254_v1  ;;  %v1257_v3 = vld [vmem:[#allocation5 + $0x24] ss:$8 sps:$4 sm:$0xff]   ;;  %v1259_v4 = vld [vmem:[#allocation5 + $0x20] ss:$8 sps:$4 sm:$0xff]  }
  0x4d   :  { %167 = vmatpush1.bf16.msra.mxu0 %v1256_v2  ;;  %v1260_v5 = vld [vmem:[#allocation5 + $0x14] ss:$8 sps:$4 sm:$0xff]   ;;  %v1262_v6 = vld [vmem:[#allocation5 + $0x10] ss:$8 sps:$4 sm:$0xff]   ;;  %v1269_v9 = vld [vmem:[#allocation7 + $0x64] ss:$8 sps:$4 sm:$0xff]  }
  0x4e   :  { %168 = vmatprep.subr.bf16.mxu0 %v1257_v3  ;;  %v1266_v7 = vld [vmem:[#allocation7 + $0x74] ss:$8 sps:$4 sm:$0xff]   ;;  %v1268_v8 = vld [vmem:[#allocation7 + $0x70] ss:$8 sps:$4 sm:$0xff]   ;;  %v1263_v10 = vld [vmem:[#allocation5 + $0x4] ss:$8 sps:$4 sm:$0xff]  }
  0x4f   :  { %393 = vmatprep.subr.bf16.mxu1 %v1266_v7  ;;  %v1271_v11 = vld [vmem:[#allocation7 + $0x60] ss:$8 sps:$4 sm:$0xff]   ;;  %v1272_v12 = vld [vmem:[#allocation7 + $0x54] ss:$8 sps:$4 sm:$0xff]   ;;  %v1274_v14 = vld [vmem:[#allocation7 + $0x50] ss:$8 sps:$4 sm:$0xff]  }
  0x50   :  { %394 = vmatpush1.bf16.msra.mxu1 %v1268_v8  ;;  %v1265_v13 = vld [vmem:[#allocation5] ss:$8 sps:$4 sm:$0xff]   ;;  %v1275_v15 = vld [vmem:[#allocation7 + $0x44] ss:$8 sps:$4 sm:$0xff]   ;;  %v105_v16 = vld [vmem:[#allocation2] sm:$0xf] }
  0x51   :  { %169 = vmatpush1.bf16.msra.mxu0 %v1259_v4  ;;  %395 = vmatprep.subr.bf16.mxu1 %v1269_v9  ;;  %v1277_v17 = vld [vmem:[#allocation7 + $0x40] ss:$8 sps:$4 sm:$0xff]   ;;  %v1278_v18 = vld [vmem:[#allocation7 + $0x34] ss:$8 sps:$4 sm:$0xff]   ;;  %v1280_v19 = vld [vmem:[#allocation7 + $0x30] ss:$8 sps:$4 sm:$0xff]  }
  0x52   :  { %170 = vmatprep.subr.bf16.mxu0 %v1260_v5  ;;  %v1281_v20 = vld [vmem:[#allocation7 + $0x24] ss:$8 sps:$4 sm:$0xff]   ;;  %v1283_v21 = vld [vmem:[#allocation7 + $0x20] ss:$8 sps:$4 sm:$0xff]   ;;  %v1284_v22 = vld [vmem:[#allocation7 + $0x14] ss:$8 sps:$4 sm:$0xff]  }
  0x53   :  { %v1286_v23 = vld [vmem:[#allocation7 + $0x10] ss:$8 sps:$4 sm:$0xff]   ;;  %v1287_v24 = vld [vmem:[#allocation7 + $0x4] ss:$8 sps:$4 sm:$0xff]   ;;  %v1289_v25 = vld [vmem:[#allocation7] ss:$8 sps:$4 sm:$0xff]  }
  0x54   :  { %396 = vmatpush1.bf16.msra.mxu1 %v1271_v11  ;;  %v1290_v26 = vld [vmem:[#allocation7 + $0xf4] ss:$8 sps:$4 sm:$0xff]   ;;  %v1292_v27 = vld [vmem:[#allocation7 + $0xf0] ss:$8 sps:$4 sm:$0xff]   ;;  %v1293_v28 = vld [vmem:[#allocation7 + $0xe4] ss:$8 sps:$4 sm:$0xff]  }
  0x55   :  { %171 = vmatpush1.bf16.msra.mxu0 %v1262_v6  ;;  %397 = vmatprep.subr.bf16.mxu1 %v1272_v12  ;;  %v1295_v29 = vld [vmem:[#allocation7 + $0xe0] ss:$8 sps:$4 sm:$0xff]   ;;  %v1296_v30 = vld [vmem:[#allocation7 + $0xd4] ss:$8 sps:$4 sm:$0xff]   ;;  %v1298_v31 = vld [vmem:[#allocation7 + $0xd0] ss:$8 sps:$4 sm:$0xff]  }
  0x56   :  { %172 = vmatprep.subr.bf16.mxu0 %v1263_v10  ;;  %v1299_v32 = vld [vmem:[#allocation7 + $0xc4] ss:$8 sps:$4 sm:$0xff]   ;;  %v1301_v33 = vld [vmem:[#allocation7 + $0xc0] ss:$8 sps:$4 sm:$0xff]   ;;  %v1302_v34 = vld [vmem:[#allocation7 + $0xb4] ss:$8 sps:$4 sm:$0xff]  }
  0x57   :  { %v1304_v35 = vld [vmem:[#allocation7 + $0xb0] ss:$8 sps:$4 sm:$0xff]   ;;  %v1305_v36 = vld [vmem:[#allocation7 + $0xa4] ss:$8 sps:$4 sm:$0xff]   ;;  %v1307_v37 = vld [vmem:[#allocation7 + $0xa0] ss:$8 sps:$4 sm:$0xff]  }
  0x58   :  { %398 = vmatpush1.bf16.msra.mxu1 %v1274_v14  ;;  %v1308_v38 = vld [vmem:[#allocation7 + $0x94] ss:$8 sps:$4 sm:$0xff]   ;;  %v1310_v39 = vld [vmem:[#allocation7 + $0x90] ss:$8 sps:$4 sm:$0xff]   ;;  %v1311_v40 = vld [vmem:[#allocation7 + $0x84] ss:$8 sps:$4 sm:$0xff]  }
  0x59   :  { %173 = vmatpush1.bf16.msra.mxu0 %v1265_v13  ;;  %399 = vmatprep.subr.bf16.mxu1 %v1275_v15  ;;  %v1313_v41 = vld [vmem:[#allocation7 + $0x80] ss:$8 sps:$4 sm:$0xff]   ;;  %v1314_v42 = vld [vmem:[#allocation8 + $0x70] ss:$8 sps:$4 sm:$0xff]   ;;  %v1316_v43 = vld [vmem:[#allocation8 + $0x74] ss:$8 sps:$4 sm:$0xff]  }
  0x5a   :  { %v1319_v44 = vld [vmem:[#allocation8 + $0x64] ss:$8 sps:$4 sm:$0xff]   ;;  %630 = vmatprep.subr.bf16.mxu0 %v1316_v43  ;;  %v1317_v45 = vld [vmem:[#allocation8 + $0x60] ss:$8 sps:$4 sm:$0xff]   ;;  %v1322_v46 = vld [vmem:[#allocation8 + $0x54] ss:$8 sps:$4 sm:$0xff]  }
  0x5b   :  { %v1320_v47 = vld [vmem:[#allocation8 + $0x50] ss:$8 sps:$4 sm:$0xff]   ;;  %v1325_v48 = vld [vmem:[#allocation8 + $0x44] ss:$8 sps:$4 sm:$0xff]   ;;  %v1323_v49 = vld [vmem:[#allocation8 + $0x40] ss:$8 sps:$4 sm:$0xff]  }
  0x5c   :  { %1107 = vmatmul.mubr.msk.bf16.vlgmr.msra.gmra.mxu0 %vm154_vm0, %v105_v16  ;;  %400 = vmatpush1.bf16.msra.mxu1 %v1277_v17  ;;  %v1328_v50 = vld [vmem:[#allocation8 + $0x34] ss:$8 sps:$4 sm:$0xff]   ;;  %v1326_v51 = vld [vmem:[#allocation8 + $0x30] ss:$8 sps:$4 sm:$0xff]   ;;  %v1331_v52 = vld [vmem:[#allocation8 + $0x24] ss:$8 sps:$4 sm:$0xff]  }
  0x5d   :  { %401 = vmatprep.subr.bf16.mxu1 %v1278_v18  ;;  %631 = vmatpush1.bf16.msra.mxu0 %v1314_v42  ;;  %v1329_v53 = vld [vmem:[#allocation8 + $0x20] ss:$8 sps:$4 sm:$0xff]   ;;  %v1334_v54 = vld [vmem:[#allocation8 + $0x14] ss:$8 sps:$4 sm:$0xff]   ;;  %v1332_v55 = vld [vmem:[#allocation8 + $0x10] ss:$8 sps:$4 sm:$0xff]  }
  0x5e   :  { %632 = vmatprep.subr.bf16.mxu0 %v1319_v44  ;;  %v1337_v56 = vld [vmem:[#allocation8 + $0x4] ss:$8 sps:$4 sm:$0xff]   ;;  %v1335_v57 = vld [vmem:[#allocation8] ss:$8 sps:$4 sm:$0xff]   ;;  %v1340_v58 = vld [vmem:[#allocation8 + $0xf4] ss:$8 sps:$4 sm:$0xff]  }
  0x5f   :  { %v1338_v59 = vld [vmem:[#allocation8 + $0xf0] ss:$8 sps:$4 sm:$0xff]   ;;  %v1343_v60 = vld [vmem:[#allocation8 + $0xe4] ss:$8 sps:$4 sm:$0xff]   ;;  %v1341_v61 = vld [vmem:[#allocation8 + $0xe0] ss:$8 sps:$4 sm:$0xff]  }
  0x60   :  { %402 = vmatpush1.bf16.msra.mxu1 %v1280_v19  ;;  %v1346_v62 = vld [vmem:[#allocation8 + $0xd4] ss:$8 sps:$4 sm:$0xff]   ;;  %v1344_v63 = vld [vmem:[#allocation8 + $0xd0] ss:$8 sps:$4 sm:$0xff]   ;;  %v1349_v0 = vld [vmem:[#allocation8 + $0xc4] ss:$8 sps:$4 sm:$0xff]  }
  0x61   :  { %403 = vmatprep.subr.bf16.mxu1 %v1281_v20  ;;  %633 = vmatpush1.bf16.msra.mxu0 %v1317_v45  ;;  %v1347_v1 = vld [vmem:[#allocation8 + $0xc0] ss:$8 sps:$4 sm:$0xff]   ;;  %v1352_v2 = vld [vmem:[#allocation8 + $0xb4] ss:$8 sps:$4 sm:$0xff]   ;;  %v1350_v3 = vld [vmem:[#allocation8 + $0xb0] ss:$8 sps:$4 sm:$0xff]  }
  0x62   :  { %634 = vmatprep.subr.bf16.mxu0 %v1322_v46  ;;  %v1355_v4 = vld [vmem:[#allocation8 + $0xa4] ss:$8 sps:$4 sm:$0xff]   ;;  %v1353_v5 = vld [vmem:[#allocation8 + $0xa0] ss:$8 sps:$4 sm:$0xff]   ;;  %v1358_v12 = vld [vmem:[#allocation8 + $0x94] ss:$8 sps:$4 sm:$0xff]  }
  0x63   :  { %v1356_v13 = vld [vmem:[#allocation8 + $0x90] ss:$8 sps:$4 sm:$0xff]   ;;  %v1361_v14 = vld [vmem:[#allocation8 + $0x84] ss:$8 sps:$4 sm:$0xff]   ;;  %v1359_v15 = vld [vmem:[#allocation8 + $0x80] ss:$8 sps:$4 sm:$0xff]  }
  0x64   :  { %404 = vmatpush1.bf16.msra.mxu1 %v1283_v21  ;;  %v1362_v16 = vld [vmem:[#allocation10 + $0x70] ss:$8 sps:$4 sm:$0xff]   ;;  %v1364_v17 = vld [vmem:[#allocation10 + $0x74] ss:$8 sps:$4 sm:$0xff]   ;;  %v1367_v18 = vld [vmem:[#allocation10 + $0x64] ss:$8 sps:$4 sm:$0xff]  }
  0x65   :  { %405 = vmatprep.subr.bf16.mxu1 %v1284_v22  ;;  %635 = vmatpush1.bf16.msra.mxu0 %v1320_v47  ;;  %v1365_v19 = vld [vmem:[#allocation10 + $0x60] ss:$8 sps:$4 sm:$0xff]   ;;  %v1370_v20 = vld [vmem:[#allocation10 + $0x54] ss:$8 sps:$4 sm:$0xff]   ;;  %v1368_v21 = vld [vmem:[#allocation10 + $0x50] ss:$8 sps:$4 sm:$0xff]  }
  0x66   :  { %636 = vmatprep.subr.bf16.mxu0 %v1325_v48  ;;  %v1373_v22 = vld [vmem:[#allocation10 + $0x44] ss:$8 sps:$4 sm:$0xff]   ;;  %v1401_v43 = vld [vmem:[#allocation10 + $0xa0] ss:$8 sps:$4 sm:$0xff]   ;;  %s1587_s4 = smov [#allocation13]  }
  0x67   :  { %v1403_v42 = vld [vmem:[#allocation10 + $0xa4] ss:$8 sps:$4 sm:$0xff]   ;;  %s1087_s5 = sshll.u32 %s1587_s4, 4  ;;  %s1088_s5 = int_to_ptr.vmem [resolvable:$true] %s1087_s5 }
  0x68   :  { %406 = vmatpush1.bf16.msra.mxu1 %v1286_v23  ;;  %v1371_v23 = vld [vmem:[#allocation10 + $0x40] ss:$8 sps:$4 sm:$0xff]   ;;  %s1546_s24 = scalar_lea.vmem %s1088_s5, 128  ;;  %p1551_p3 = scmp.lt.s32.totalorder %s1088_s5, %s1088_s5 }
  0x69   :  { %407 = vmatprep.subr.bf16.mxu1 %v1287_v24  ;;  %637 = vmatpush1.bf16.msra.mxu0 %v1323_v49  ;;  %v1376_v24 = vld [vmem:[#allocation10 + $0x34] ss:$8 sps:$4 sm:$0xff]   ;;  %p1547_p2 = scmp.ne.s32.totalorder %s1088_s5, %s1546_s24  ;;  %p1552_p4 = scmp.lt.s32.totalorder %s1546_s24, %s1546_s24 }
  0x6a   :  { %638 = vmatprep.subr.bf16.mxu0 %v1328_v50 }
  0x6b   :  { %p1553_p5 = por %p1552_p4, %p1551_p3 }
  0x6c   :  { %408 = vmatpush1.bf16.msra.mxu1 %v1289_v25  ;;  %v1374_v25 = vld [vmem:[#allocation10 + $0x30] ss:$8 sps:$4 sm:$0xff]  }
  0x6d   :  { %409 = vmatprep.subr.bf16.mxu1 %v1290_v26  ;;  %639 = vmatpush1.bf16.msra.mxu0 %v1326_v51  ;;  %v1379_v26 = vld [vmem:[#allocation10 + $0x24] ss:$8 sps:$4 sm:$0xff]   ;;  %p1554_p6 = pnand %p1553_p5, %p1547_p2 }
  0x6e   :  { %640 = vmatprep.subr.bf16.mxu0 %v1331_v52  ;;  %v1406_v52 = vld [vmem:[#allocation10 + $0x94] ss:$8 sps:$4 sm:$0xff]  }
  0x70   :  { %410 = vmatpush2.bf16.msra.mxu1 %v1292_v27  ;;  %v1377_v27 = vld [vmem:[#allocation10 + $0x20] ss:$8 sps:$4 sm:$0xff]  }
  0x71   :  { %411 = vmatprep.subr.bf16.mxu1 %v1293_v28  ;;  %641 = vmatpush1.bf16.msra.mxu0 %v1329_v53  ;;  %v1382_v28 = vld [vmem:[#allocation10 + $0x14] ss:$8 sps:$4 sm:$0xff]   ;;  %v1404_v53 = vld [vmem:[#allocation10 + $0x90] ss:$8 sps:$4 sm:$0xff]  }
  0x72   :  { %642 = vmatprep.subr.bf16.mxu0 %v1334_v54  ;;  %v1409_v54 = vld [vmem:[#allocation10 + $0x84] ss:$8 sps:$4 sm:$0xff]  }
  0x74   :  { %412 = vmatpush2.bf16.msra.mxu1 %v1295_v29  ;;  %v1380_v29 = vld [vmem:[#allocation10 + $0x10] ss:$8 sps:$4 sm:$0xff]  }
  0x75   :  { %413 = vmatprep.subr.bf16.mxu1 %v1296_v30  ;;  %643 = vmatpush1.bf16.msra.mxu0 %v1332_v55  ;;  %v1385_v30 = vld [vmem:[#allocation10 + $0x4] ss:$8 sps:$4 sm:$0xff]   ;;  %v1407_v55 = vld [vmem:[#allocation10 + $0x80] ss:$8 sps:$4 sm:$0xff]  }
  0x76   :  { %644 = vmatprep.subr.bf16.mxu0 %v1337_v56  ;;  %v1410_v56 = vld [vmem:[#allocation11 + $0x78] sm:$0xff]  }
  0x78   :  { %414 = vmatpush2.bf16.msra.mxu1 %v1298_v31  ;;  %v1383_v31 = vld [vmem:[#allocation10] ss:$8 sps:$4 sm:$0xff]  }
  0x79   :  { %415 = vmatprep.subr.bf16.mxu1 %v1299_v32  ;;  %645 = vmatpush1.bf16.msra.mxu0 %v1335_v57  ;;  %v1388_v32 = vld [vmem:[#allocation10 + $0xf4] ss:$8 sps:$4 sm:$0xff]  }
  0x7a   :  { %646 = vmatprep.subr.bf16.mxu0 %v1340_v58  ;;  %v1411_v57 = vld [vmem:[#allocation11 + $0x38] sm:$0xff]   ;;  %v1412_v58 = vld [vmem:[#allocation11 + $0x70] sm:$0xff]  }
  0x7c   :  { %416 = vmatpush2.bf16.msra.mxu1 %v1301_v33  ;;  %v1386_v33 = vld [vmem:[#allocation10 + $0xf0] ss:$8 sps:$4 sm:$0xff]  }
  0x7d   :  { %417 = vmatprep.subr.bf16.mxu1 %v1302_v34  ;;  %647 = vmatpush2.bf16.msra.mxu0 %v1338_v59  ;;  %v1391_v34 = vld [vmem:[#allocation10 + $0xe4] ss:$8 sps:$4 sm:$0xff]   ;;  %v1413_v59 = vld [vmem:[#allocation11 + $0x30] sm:$0xff]  }
  0x7e   :  { %648 = vmatprep.subr.bf16.mxu0 %v1343_v60  ;;  %v1414_v60 = vld [vmem:[#allocation11 + $0x68] sm:$0xff]  }
  0x80   :  { %418 = vmatpush2.bf16.msra.mxu1 %v1304_v35  ;;  %v1389_v35 = vld [vmem:[#allocation10 + $0xe0] ss:$8 sps:$4 sm:$0xff]  }
  0x81   :  { %419 = vmatprep.subr.bf16.mxu1 %v1305_v36  ;;  %649 = vmatpush2.bf16.msra.mxu0 %v1341_v61  ;;  %v1394_v36 = vld [vmem:[#allocation10 + $0xd4] ss:$8 sps:$4 sm:$0xff]   ;;  %v1415_v61 = vld [vmem:[#allocation11 + $0x28] sm:$0xff]  }
  0x82   :  { %650 = vmatprep.subr.bf16.mxu0 %v1346_v62  ;;  %v1416_v62 = vld [vmem:[#allocation11 + $0x60] sm:$0xff]  }
  0x84   :  { %420 = vmatpush2.bf16.msra.mxu1 %v1307_v37  ;;  %v1392_v37 = vld [vmem:[#allocation10 + $0xd0] ss:$8 sps:$4 sm:$0xff]  }
  0x85   :  { %421 = vmatprep.subr.bf16.mxu1 %v1308_v38  ;;  %651 = vmatpush2.bf16.msra.mxu0 %v1344_v63  ;;  %v1397_v38 = vld [vmem:[#allocation10 + $0xc4] ss:$8 sps:$4 sm:$0xff]  }
  0x86   :  { %652 = vmatprep.subr.bf16.mxu0 %v1349_v0  ;;  %v1417_v63 = vld [vmem:[#allocation11 + $0x20] sm:$0xff]   ;;  %v1418_v0 = vld [vmem:[#allocation11 + $0x58] sm:$0xff]  }
  0x88   :  { %422 = vmatpush2.bf16.msra.mxu1 %v1310_v39  ;;  %v1395_v39 = vld [vmem:[#allocation10 + $0xc0] ss:$8 sps:$4 sm:$0xff]  }
  0x89   :  { %423 = vmatprep.subr.bf16.mxu1 %v1311_v40  ;;  %653 = vmatpush2.bf16.msra.mxu0 %v1347_v1  ;;  %v1400_v40 = vld [vmem:[#allocation10 + $0xb4] ss:$8 sps:$4 sm:$0xff]  }
  0x8a   :  { %654 = vmatprep.subr.bf16.mxu0 %v1352_v2  ;;  %v1419_v1 = vld [vmem:[#allocation11 + $0x18] sm:$0xff]   ;;  %v1420_v2 = vld [vmem:[#allocation11 + $0x50] sm:$0xff]  }
  0x8c   :  { %424 = vmatpush2.bf16.msra.mxu1 %v1313_v41  ;;  %v1398_v41 = vld [vmem:[#allocation10 + $0xb0] ss:$8 sps:$4 sm:$0xff]  }
  0x8d   :  { %655 = vmatpush2.bf16.msra.mxu0 %v1350_v3  ;;  %867 = vmatprep.subr.bf16.mxu1 %v1364_v17  ;;  %v1421_v3 = vld [vmem:[#allocation11 + $0x10] sm:$0xff]  }
  0x8e   :  { %656 = vmatprep.subr.bf16.mxu0 %v1355_v4 }
  0x91   :  { %657 = vmatpush2.bf16.msra.mxu0 %v1353_v5 }
  0x92   :  { %658 = vmatprep.subr.bf16.mxu0 %v1358_v12  ;;  %v1422_v12 = vld [vmem:[#allocation11 + $0x48] sm:$0xff]  }
  0x95   :  { %659 = vmatpush2.bf16.msra.mxu0 %v1356_v13  ;;  %v1423_v13 = vld [vmem:[#allocation11 + $0x8] sm:$0xff]  }
  0x96   :  { %660 = vmatprep.subr.bf16.mxu0 %v1361_v14  ;;  %v1424_v14 = vld [vmem:[#allocation11 + $0x40] sm:$0xff]  }
  0x99   :  { %661 = vmatpush2.bf16.msra.mxu0 %v1359_v15  ;;  %v1425_v15 = vld [vmem:[#allocation11] sm:$0xff]  }
  0x9a   :  { %1220 = vmatprep.subr.bf16.mxu0 %v1410_v56 }
 0x11c   :  { %v192_v6 = vpop.f32.mrf.mxu0 }
 0x11d   :  { %v199_v9 = vpack.c.bf16 %v192_v6, %v192_v6 }
 0x11e   :  { %v194_v7 = vpop.f32.mrf.mxu0 }
 0x11f   :  { %v200_v8 = vpack.c.bf16 %v194_v7, %v194_v7 }
 0x120   :  { %v196_v10 = vpop.f32.mrf.mxu0 }
 0x121   :  { %425 = vmatprep.mubr.bf16.mxu1 %v200_v8 }
 0x122   :  { %v197_v11 = vpop.f32.mrf.mxu0  ;;  %426 = vmatmul.mubr.bf16.vlgmr.msra.gmra.mxu1 %v199_v9 }
 0x123   :  { %868 = vmatpush1.bf16.msra.mxu1 %v1362_v16 }
 0x124   :  { %869 = vmatprep.subr.bf16.mxu1 %v1367_v18 }
 0x127   :  { %870 = vmatpush1.bf16.msra.mxu1 %v1365_v19 }
 0x128   :  { %871 = vmatprep.subr.bf16.mxu1 %v1370_v20 }
 0x12b   :  { %872 = vmatpush1.bf16.msra.mxu1 %v1368_v21 }
 0x12c   :  { %873 = vmatprep.subr.bf16.mxu1 %v1373_v22 }
 0x12f   :  { %874 = vmatpush1.bf16.msra.mxu1 %v1371_v23 }
 0x130   :  { %875 = vmatprep.subr.bf16.mxu1 %v1376_v24 }
 0x133   :  { %876 = vmatpush1.bf16.msra.mxu1 %v1374_v25 }
 0x134   :  { %877 = vmatprep.subr.bf16.mxu1 %v1379_v26 }
 0x137   :  { %878 = vmatpush1.bf16.msra.mxu1 %v1377_v27 }
 0x138   :  { %879 = vmatprep.subr.bf16.mxu1 %v1382_v28 }
 0x13b   :  { %880 = vmatpush1.bf16.msra.mxu1 %v1380_v29 }
 0x13c   :  { %881 = vmatprep.subr.bf16.mxu1 %v1385_v30 }
 0x13f   :  { %882 = vmatpush1.bf16.msra.mxu1 %v1383_v31 }
 0x140   :  { %883 = vmatprep.subr.bf16.mxu1 %v1388_v32 }
 0x143   :  { %884 = vmatpush2.bf16.msra.mxu1 %v1386_v33 }
 0x144   :  { %885 = vmatprep.subr.bf16.mxu1 %v1391_v34 }
 0x147   :  { %886 = vmatpush2.bf16.msra.mxu1 %v1389_v35 }
 0x148   :  { %887 = vmatprep.subr.bf16.mxu1 %v1394_v36 }
 0x14b   :  { %888 = vmatpush2.bf16.msra.mxu1 %v1392_v37 }
 0x14c   :  { %889 = vmatprep.subr.bf16.mxu1 %v1397_v38 }
 0x14f   :  { %890 = vmatpush2.bf16.msra.mxu1 %v1395_v39 }
 0x150   :  { %891 = vmatprep.subr.bf16.mxu1 %v1400_v40 }
 0x153   :  { %892 = vmatpush2.bf16.msra.mxu1 %v1398_v41 }
 0x154   :  { %893 = vmatprep.subr.bf16.mxu1 %v1403_v42 }
 0x157   :  { %894 = vmatpush2.bf16.msra.mxu1 %v1401_v43 }
 0x158   :  { %895 = vmatprep.subr.bf16.mxu1 %v1406_v52 }
 0x15b   :  { %896 = vmatpush2.bf16.msra.mxu1 %v1404_v53 }
 0x15c   :  { %897 = vmatprep.subr.bf16.mxu1 %v1409_v54 }
 0x15f   :  { %898 = vmatpush2.bf16.msra.mxu1 %v1407_v55 }
 0x1e2   :  { %v427_v44 = vpop.f32.mrf.mxu1 }
 0x1e3   :  { %v434_v45 = vmax.f32 %v427_v44, 0.0 }
 0x1e4   :  { %v429_v46 = vpop.f32.mrf.mxu1 }
 0x1e5   :  { %v435_v47 = vmax.f32 %v429_v46, 0.0  ;;  %v436_v50 = vpack.c.bf16 %v434_v45, %v434_v45 }
 0x1e6   :  { %v431_v48 = vpop.f32.mrf.mxu1 }
 0x1e7   :  { %v437_v49 = vpack.c.bf16 %v435_v47, %v435_v47 }
 0x1e8   :  { %v432_v51 = vpop.f32.mrf.mxu1 }
 0x1e9   :  { %662 = vmatprep.mubr.bf16.mxu0 %v437_v49 }
 0x1ea   :  { %663 = vmatmul.mubr.bf16.vlgmr.msra.gmra.mxu0 %v436_v50 }
 0x1eb   :  { %1221 = vmatpush3.bf16.msra.mxu0 %v1411_v57 }
 0x1ec   :  { %1222 = vmatprep.subr.bf16.mxu0 %v1412_v58 }
 0x1ef   :  { %1223 = vmatpush3.bf16.msra.mxu0 %v1413_v59 }
 0x1f0   :  { %1224 = vmatprep.subr.bf16.mxu0 %v1414_v60 }
 0x1f3   :  { %1225 = vmatpush3.bf16.msra.mxu0 %v1415_v61 }
 0x1f4   :  { %1226 = vmatprep.subr.bf16.mxu0 %v1416_v62 }
 0x1f7   :  { %1227 = vmatpush3.bf16.msra.mxu0 %v1417_v63 }
 0x1f8   :  { %1228 = vmatprep.subr.bf16.mxu0 %v1418_v0 }
 0x1fb   :  { %1229 = vmatpush3.bf16.msra.mxu0 %v1419_v1 }
 0x1fc   :  { %1230 = vmatprep.subr.bf16.mxu0 %v1420_v2 }
 0x1ff   :  { %1231 = vmatpush3.bf16.msra.mxu0 %v1421_v3 }
 0x200   :  { %1232 = vmatprep.subr.bf16.mxu0 %v1422_v12 }
 0x203   :  { %1233 = vmatpush3.bf16.msra.mxu0 %v1423_v13 }
 0x204   :  { %1234 = vmatprep.subr.bf16.mxu0 %v1424_v14 }
 0x207   :  { %1235 = vmatpush3.bf16.msra.mxu0 %v1425_v15 }
 0x2aa   :  { %v664_v4 = vpop.f32.mrf.mxu0 }
 0x2ab   :  { %v671_v5 = vmax.f32 %v664_v4, 0.0 }
 0x2ac   :  { %v666_v6 = vpop.f32.mrf.mxu0 }
 0x2ad   :  { %v672_v7 = vmax.f32 %v666_v6, 0.0  ;;  %v673_v10 = vpack.c.bf16 %v671_v5, %v671_v5 }
 0x2ae   :  { %v668_v8 = vpop.f32.mrf.mxu0 }
 0x2af   :  { %v674_v9 = vpack.c.bf16 %v672_v7, %v672_v7 }
 0x2b0   :  { %v669_v11 = vpop.f32.mrf.mxu0 }
 0x2b1   :  { %899 = vmatprep.mubr.bf16.mxu1 %v674_v9 }
 0x2b2   :  { %900 = vmatmul.mubr.bf16.vlgmr.msra.gmra.mxu1 %v673_v10 }
 0x372   :  { %v901_v16 = vpop.f32.mrf.mxu1 }
 0x373   :  { %v908_v17 = vmax.f32 %v901_v16, 0.0 }
 0x374   :  { %v903_v18 = vpop.f32.mrf.mxu1 }
 0x375   :  { %v909_v19 = vmax.f32 %v903_v18, 0.0  ;;  %v910_v22 = vpack.c.bf16 %v908_v17, %v908_v17 }
 0x376   :  { %v905_v20 = vpop.f32.mrf.mxu1 }
 0x377   :  { %v911_v21 = vpack.c.bf16 %v909_v19, %v909_v19 }
 0x378   :  { %v906_v23 = vpop.f32.mrf.mxu1 }
 0x379   :  { %1072 = vmatprep.mubr.bf16.mxu0 %v911_v21 }
 0x37a   :  { %1073 = vmatmul.mubr.bf16.vlgmr.msra.gmra.mxu0 %v910_v22 }
 0x43a   :  { %v1236_v24 = vpop.f32.mrf.mxu0 }
 0x43c   :  { %v1237_v25 = vpop.f32.mrf.mxu0 }
 0x43d   :  { %v1238_v26 = vadd.f32 %v1237_v25, %v1236_v24 }
 0x43e   :  { %v1239_v27 = vpop.f32.mrf.mxu0 }
 0x43f   :  { %1080 = vst [vmem:[#allocation13] sm:$0xff] %v1238_v26 }
 0x440   :  { %v1240_v28 = vpop.f32.mrf.mxu0 }
 0x441   :  { %1557 = shalt.err (!%p1554_p6)
}
 0x442   :  { %1090 = dma.vmem_to_hbm [thread:$0]  %s1088_s5, 128, %s1662_s6, [#allocation4]  }
 0x443   :  { %1574 = dma.done.wait [#allocation4], 128  }
 0x444   :  { %1575 = vsyncadd [#allocation4], 4294967168 }
 0x445   :  { %1094 = vsyncpa [#allocation3], 1 }
 0x446   :  { %1095 = vsyncpa [#allocation6], 1 }
 0x447   :  { %1096 = vsyncpa [#allocation9], 1 }
 0x448   :  { %1097 = vsyncpa [#allocation12], 1 }
 0x449   :  { %1098 = vsyncpa [#allocation4], 1 }

</bundles_post_ra>
